<compile_context>
chip_gen: v6e
topology: v6e:2x2x1
jax: 0.10.0
libtpu: 0.0.40
codegen_flags: <defaults>
</compile_context>

<pallas_src>
import jax
import jax.numpy as jnp
from jax import lax
from jax.experimental import pallas as pl
from jax.experimental.pallas import tpu as pltpu

_SMOOTH = 1e-06
_LANES = 128
_NC = 2  # leading "parallel" grid axis: 2-TensorCore split on v7x, no-op on 1-TC chips


def _round_up(v, m):
    return (v + m - 1) // m * m


def _sublanes_for(dtype, n):
    """Dtype-dependent slab height (8 f32 / 16 bf16 / 32 int8); fall back to 8
    rather than forcing an HBM pad copy when n isn't divisible."""
    item = jnp.dtype(dtype).itemsize
    s = 8 if item >= 4 else (16 if item == 2 else 32)
    while s > 8 and n % s != 0:
        s //= 2
    return s


def _choose_lane_tile(m, b, s, x_item, t_item):
    # Big tiles amortize the ~0.35 us/grid-step overhead; keep
    # 2 pipeline buffers x (x block + t block) comfortably inside v7x's 64 MiB.
    target_x_block = 6 * 1024 * 1024
    buffer_budget = 32 * 1024 * 1024
    tn = target_x_block // max(1, b * s * x_item)
    tn = min(tn, buffer_budget // max(1, 2 * s * (b * x_item + t_item)))
    tn = max(_LANES, (tn // _LANES) * _LANES)
    tn = min(tn, 64 * 1024)
    # Never let a block *start* past the data; the last block may stick out and
    # its ragged tail is masked in-kernel.
    tn = min(tn, max(_LANES, (m // _LANES) * _LANES))
    return int(tn)


def dice_loss(inputs: jax.Array, targets: jax.Array) -> jax.Array:
    """inputs: [B, ...]; targets: [...] with matching per-slice element count.

    Returns a float32 [B] vector; element i equals the i-th entry of the
    Python list returned by the PyTorch module.
    """
    B = inputs.shape[0]
    x = inputs.reshape(B, -1)          # native dtype through the DMA
    t = targets.reshape(-1)
    N = x.shape[1]
    assert t.shape[0] == N, "per-slice numel must match targets numel"

    x_item = jnp.dtype(x.dtype).itemsize
    t_item = jnp.dtype(t.dtype).itemsize

    S = _sublanes_for(x.dtype, N)
    # Minimal padding: only if numel isn't a multiple of S (rare) or the slice is
    # tiny (< S*128 elems).  No rounding up to a full lane tile -> no extra HBM
    # pass for typical shapes; zero padding is exact for all three sums.
    n_pad = _round_up(N, S)
    if n_pad // S < _LANES:
        n_pad = S * _LANES
    if n_pad != N:
        x = jnp.pad(x, ((0, 0), (0, n_pad - N)))
        t = jnp.pad(t, ((0, n_pad - N),))
    M = n_pad // S
    x = x.reshape(B, S, M)             # free (view) reshape when n_pad == N
    t = t.reshape(S, M)

    TN = _choose_lane_tile(M, B, S, x_item, t_item)
    KT = -(-M // TN)                   # total lane tiles
    KH = -(-KT // _NC)                 # lane tiles handled per core
    R = M - (KT - 1) * TN              # valid lanes in the last tile (1..TN)
    tail_full = R // _LANES
    tail_rem = R % _LANES
    n_full = TN // _LANES

    def kernel(x_ref, t_ref, inter_ref, xsum_ref, tsum_ref):
        # x_ref: (B, S, TN) native dtype      t_ref: (S, TN) native dtype
        # inter_ref/xsum_ref: (B, S, 128) f32 lane partials (this core's rows)
        # tsum_ref: (S, 128) f32 lane partials
        c = pl.program_id(0)
        k = pl.program_id(1)
        gk = c * KH + k                # global lane-tile index

        @pl.when(k == 0)
        def _init():
            inter_ref[...] = jnp.zeros_like(inter_ref)
            xsum_ref[...] = jnp.zeros_like(xsum_ref)
            tsum_ref[...] = jnp.zeros_like(tsum_ref)

        def acc_chunk(off, valid=None):
            # One aligned 128-lane chunk: loads + VPU mul/add only (no relayout).
            xs = x_ref[:, :, pl.ds(off, _LANES)].astype(jnp.float32)   # (B,S,128)
            ts = t_ref[:, pl.ds(off, _LANES)].astype(jnp.float32)      # (S,128)
            if valid is not None:      # static ragged tail: zero garbage lanes
                lane = lax.broadcasted_iota(jnp.int32, (S, _LANES), 1)
                msk = lane < valid
                xs = jnp.where(msk[None], xs, 0.0)
                ts = jnp.where(msk, ts, 0.0)
            inter_ref[...] += xs * ts[None]
            xsum_ref[...] += xs
            tsum_ref[...] += ts

        def acc_chunks(nchunks):
            if nchunks <= 0:
                return

            def body(j, carry):
                acc_chunk(pl.multiple_of(j * _LANES, _LANES))
                return carry

            lax.fori_loop(0, nchunks, body, 0, unroll=min(8, nchunks))

        if R == TN:
            # No ragged tail: every real tile is full; skip the (possible)
            # overshoot tile of the 2-core split.
            @pl.when(gk < KT)
            def _full():
                acc_chunks(n_full)
        else:
            @pl.when(gk < KT - 1)
            def _full():
                acc_chunks(n_full)

            @pl.when(gk == KT - 1)
            def _tail():
                acc_chunks(tail_full)
                if tail_rem:
                    acc_chunk(pl.multiple_of(tail_full * _LANES, _LANES),
                              valid=tail_rem)

    def lane_idx(c, k):
        # Clamp the (skipped) overshoot tile of core 1 when KT is odd so the DMA
        # never targets a block past the array end.
        return jnp.minimum(c * KH + k, KT - 1)

    out_bytes = (2 * _NC * B * S * _LANES + _NC * S * _LANES) * 4
    cost = pl.CostEstimate(
        flops=3 * B * N,
        transcendentals=0,
        bytes_accessed=B * n_pad * x_item + n_pad * t_item + out_bytes,
    )

    # Only raise the scoped-VMEM limit when the tile choice actually needs it.
    est_vmem = (2 * (B * S * TN * x_item + S * TN * t_item)
                + 4 * (2 * B * S * _LANES * 4 + S * _LANES * 4))
    vmem_limit = None if est_vmem < 30 * 1024 * 1024 else 48 * 1024 * 1024

    inter_p, xsum_p, tsum_p = pl.pallas_call(
        kernel,
        out_shape=(
            jax.ShapeDtypeStruct((_NC, B, S, _LANES), jnp.float32),
            jax.ShapeDtypeStruct((_NC, B, S, _LANES), jnp.float32),
            jax.ShapeDtypeStruct((_NC, S, _LANES), jnp.float32),
        ),
        grid_spec=pltpu.PrefetchScalarGridSpec(
            num_scalar_prefetch=0,
            grid=(_NC, KH),
            in_specs=[
                pl.BlockSpec((B, S, TN), lambda c, k: (0, 0, lane_idx(c, k))),
                pl.BlockSpec((S, TN), lambda c, k: (0, lane_idx(c, k))),
            ],
            out_specs=[
                pl.BlockSpec((None, B, S, _LANES), lambda c, k: (c, 0, 0, 0)),
                pl.BlockSpec((None, B, S, _LANES), lambda c, k: (c, 0, 0, 0)),
                pl.BlockSpec((None, S, _LANES), lambda c, k: (c, 0, 0)),
            ],
        ),
        compiler_params=pltpu.CompilerParams(
            dimension_semantics=("parallel", "arbitrary"),
            vmem_limit_bytes=vmem_limit,
        ),
        cost_estimate=cost,
    )(x, t)

    # Dice is nonlinear: combine RAW partials across cores/lanes first, divide
    # after (tiny wrapper-side reductions on ~KBs of data).
    inter = inter_p.sum(axis=(0, 2, 3))     # (B,)
    x_sum = xsum_p.sum(axis=(0, 2, 3))      # (B,)
    t_sum = tsum_p.sum()                    # scalar
    dice = (2.0 * inter + _SMOOTH) / (x_sum + t_sum + _SMOOTH)
    return 1.0 - dice


def _reference(inputs, targets):
    # Pure-JAX mirror of the PyTorch loop.
    t_flat = targets.reshape(-1).astype(jnp.float32)
    losses = []
    for i in range(inputs.shape[0]):
        x_flat = inputs[i].reshape(-1).astype(jnp.float32)
        inter = jnp.sum(x_flat * t_flat)
        score = (2.0 * inter + _SMOOTH) / (jnp.sum(x_flat) + jnp.sum(t_flat) + _SMOOTH)
        losses.append(1.0 - score)
    return jnp.stack(losses)


if __name__ == "__main__":
    key = jax.random.PRNGKey(0)
    k1, k2, k3, k4 = jax.random.split(key, 4)

    # Case 1: tile-aligned slices (B=2, C=4, 16x16 -> 1024 elems per slice).
    B, C, H, W = 2, 4, 16, 16
    inputs = jax.nn.sigmoid(jax.random.normal(k1, (B, C, H, W), jnp.float32))
    targets = (jax.random.uniform(k2, (C, H, W)) > 0.5).astype(jnp.float32)
    out = dice_loss(inputs, targets)
    jax.block_until_ready(out)
    ref = _reference(inputs, targets)
    assert jnp.allclose(out, ref, rtol=1e-5, atol=1e-6), (out, ref)

    # Case 2: ragged lane tail (1536 elems/slice -> last 128-lane tile partial);
    # exercises the in-kernel tail masking and both rows of the 2-core split.
    B2, C2 = 2, 6
    inputs2 = jax.nn.sigmoid(jax.random.normal(k3, (B2, C2, H, W), jnp.float32))
    targets2 = (jax.random.uniform(k4, (C2, H, W)) > 0.5).astype(jnp.float32)
    out2 = dice_loss(inputs2, targets2)
    jax.block_until_ready(out2)
    ref2 = _reference(inputs2, targets2)
    assert jnp.allclose(out2, ref2, rtol=1e-5, atol=1e-6), (out2, ref2)

    print("KERNEL_OK")
</pallas_src>

<mosaic_0001>
module attributes {stable_mosaic.version = 11 : i64} {
  func.func @kernel(%arg0: i32, %arg1: i32, %arg2: memref<2x8x128xf32, #tpu.memory_space<vmem>>, %arg3: memref<8x128xf32, #tpu.memory_space<vmem>>, %arg4: memref<1x2x8x128xf32, #tpu.memory_space<vmem>>, %arg5: memref<1x2x8x128xf32, #tpu.memory_space<vmem>>, %arg6: memref<1x8x128xf32, #tpu.memory_space<vmem>>) attributes {dimension_semantics = [#tpu.dimension_semantics<parallel>, #tpu.dimension_semantics<arbitrary>], iteration_bounds = array<i64: 2, 1>, scalar_prefetch = 0 : i64, scratch_operands = 0 : i64, tpu.core_type = #tpu.core_type<tc>, window_params = [{transform_indices = @transform_0, window_bounds = array<i64: 2, 8, 128>}, {transform_indices = @transform_1, window_bounds = array<i64: 8, 128>}, {transform_indices = @transform_2, window_bounds = array<i64: 1, 2, 8, 128>}, {transform_indices = @transform_3, window_bounds = array<i64: 1, 2, 8, 128>}, {transform_indices = @transform_4, window_bounds = array<i64: 1, 8, 128>}]} {
    %c1_i32 = arith.constant 1 : i32
    %0 = arith.muli %arg0, %c1_i32 : i32
    %1 = arith.addi %0, %arg1 : i32
    %c0_i32 = arith.constant 0 : i32
    %2 = arith.cmpi eq, %arg1, %c0_i32 : i32
    %3 = arith.extui %2 : i1 to i32
    %c0_i32_0 = arith.constant 0 : i32
    %4 = arith.cmpi ne, %3, %c0_i32_0 : i32
    scf.if %4 {
      %cst = arith.constant 0.000000e+00 : f32
      %8 = vector.broadcast %cst : f32 to vector<2x8x128xf32>
      %c0 = arith.constant 0 : index
      %c0_3 = arith.constant 0 : index
      %c0_4 = arith.constant 0 : index
      %c0_5 = arith.constant 0 : index
      %9 = vector.load %arg4[%c0, %c0_3, %c0_4, %c0_5] : memref<1x2x8x128xf32, #tpu.memory_space<vmem>>, vector<1x2x8x128xf32>
      %10 = vector.shape_cast %9 : vector<1x2x8x128xf32> to vector<2x8x128xf32>
      %11 = vector.shape_cast %8 : vector<2x8x128xf32> to vector<1x2x8x128xf32>
      tpu.vector_store %arg4[%c0, %c0_3, %c0_4, %c0_5], %11 {strides = array<i32>} : memref<1x2x8x128xf32, #tpu.memory_space<vmem>>, vector<1x2x8x128xf32>,
      %cst_6 = arith.constant 0.000000e+00 : f32
      %12 = vector.broadcast %cst_6 : f32 to vector<2x8x128xf32>
      %c0_7 = arith.constant 0 : index
      %c0_8 = arith.constant 0 : index
      %c0_9 = arith.constant 0 : index
      %c0_10 = arith.constant 0 : index
      %13 = vector.load %arg5[%c0_7, %c0_8, %c0_9, %c0_10] : memref<1x2x8x128xf32, #tpu.memory_space<vmem>>, vector<1x2x8x128xf32>
      %14 = vector.shape_cast %13 : vector<1x2x8x128xf32> to vector<2x8x128xf32>
      %15 = vector.shape_cast %12 : vector<2x8x128xf32> to vector<1x2x8x128xf32>
      tpu.vector_store %arg5[%c0_7, %c0_8, %c0_9, %c0_10], %15 {strides = array<i32>} : memref<1x2x8x128xf32, #tpu.memory_space<vmem>>, vector<1x2x8x128xf32>,
      %cst_11 = arith.constant 0.000000e+00 : f32
      %16 = vector.broadcast %cst_11 : f32 to vector<8x128xf32>
      %c0_12 = arith.constant 0 : index
      %c0_13 = arith.constant 0 : index
      %c0_14 = arith.constant 0 : index
      %17 = vector.load %arg6[%c0_12, %c0_13, %c0_14] : memref<1x8x128xf32, #tpu.memory_space<vmem>>, vector<1x8x128xf32>
      %18 = vector.shape_cast %17 : vector<1x8x128xf32> to vector<8x128xf32>
      %19 = vector.shape_cast %16 : vector<8x128xf32> to vector<1x8x128xf32>
      tpu.vector_store %arg6[%c0_12, %c0_13, %c0_14], %19 {strides = array<i32>} : memref<1x8x128xf32, #tpu.memory_space<vmem>>, vector<1x8x128xf32>,
    } else {
    }
    %c1_i32_1 = arith.constant 1 : i32
    %5 = arith.cmpi slt, %1, %c1_i32_1 : i32
    %6 = arith.extui %5 : i1 to i32
    %c0_i32_2 = arith.constant 0 : i32
    %7 = arith.cmpi ne, %6, %c0_i32_2 : i32
    scf.if %7 {
      %c0_i32_3 = arith.constant 0 : i32
      %c128_i32 = arith.constant 128 : i32
      %8 = arith.muli %c0_i32_3, %c128_i32 : i32
      %9 = tpu.assume_multiple %8, 128 : i32
      %c0 = arith.constant 0 : index
      %c0_4 = arith.constant 0 : index
      %10 = arith.index_cast %9 : i32 to index
      %11 = vector.load %arg2[%c0, %c0_4, %10] : memref<2x8x128xf32, #tpu.memory_space<vmem>>, vector<2x8x128xf32>
      %c0_5 = arith.constant 0 : index
      %12 = arith.index_cast %9 : i32 to index
      %13 = vector.load %arg3[%c0_5, %12] : memref<8x128xf32, #tpu.memory_space<vmem>>, vector<8x128xf32>
      %c0_6 = arith.constant 0 : index
      %c0_7 = arith.constant 0 : index
      %c0_8 = arith.constant 0 : index
      %c0_9 = arith.constant 0 : index
      %14 = vector.load %arg4[%c0_6, %c0_7, %c0_8, %c0_9] : memref<1x2x8x128xf32, #tpu.memory_space<vmem>>, vector<1x2x8x128xf32>
      %15 = vector.shape_cast %14 : vector<1x2x8x128xf32> to vector<2x8x128xf32>
      %16 = vector.shape_cast %13 : vector<8x128xf32> to vector<1x8x128xf32>
      %17 = vector.broadcast %16 : vector<1x8x128xf32> to vector<2x8x128xf32>
      %18 = arith.mulf %11, %17 : vector<2x8x128xf32>
      %19 = arith.addf %15, %18 : vector<2x8x128xf32>
      %c0_10 = arith.constant 0 : index
      %c0_11 = arith.constant 0 : index
      %c0_12 = arith.constant 0 : index
      %c0_13 = arith.constant 0 : index
      %20 = vector.load %arg4[%c0_10, %c0_11, %c0_12, %c0_13] : memref<1x2x8x128xf32, #tpu.memory_space<vmem>>, vector<1x2x8x128xf32>
      %21 = vector.shape_cast %20 : vector<1x2x8x128xf32> to vector<2x8x128xf32>
      %22 = vector.shape_cast %19 : vector<2x8x128xf32> to vector<1x2x8x128xf32>
      tpu.vector_store %arg4[%c0_10, %c0_11, %c0_12, %c0_13], %22 {strides = array<i32>} : memref<1x2x8x128xf32, #tpu.memory_space<vmem>>, vector<1x2x8x128xf32>,
      %c0_14 = arith.constant 0 : index
      %c0_15 = arith.constant 0 : index
      %c0_16 = arith.constant 0 : index
      %c0_17 = arith.constant 0 : index
      %23 = vector.load %arg5[%c0_14, %c0_15, %c0_16, %c0_17] : memref<1x2x8x128xf32, #tpu.memory_space<vmem>>, vector<1x2x8x128xf32>
      %24 = vector.shape_cast %23 : vector<1x2x8x128xf32> to vector<2x8x128xf32>
      %25 = arith.addf %24, %11 : vector<2x8x128xf32>
      %c0_18 = arith.constant 0 : index
      %c0_19 = arith.constant 0 : index
      %c0_20 = arith.constant 0 : index
      %c0_21 = arith.constant 0 : index
      %26 = vector.load %arg5[%c0_18, %c0_19, %c0_20, %c0_21] : memref<1x2x8x128xf32, #tpu.memory_space<vmem>>, vector<1x2x8x128xf32>
      %27 = vector.shape_cast %26 : vector<1x2x8x128xf32> to vector<2x8x128xf32>
      %28 = vector.shape_cast %25 : vector<2x8x128xf32> to vector<1x2x8x128xf32>
      tpu.vector_store %arg5[%c0_18, %c0_19, %c0_20, %c0_21], %28 {strides = array<i32>} : memref<1x2x8x128xf32, #tpu.memory_space<vmem>>, vector<1x2x8x128xf32>,
      %c0_22 = arith.constant 0 : index
      %c0_23 = arith.constant 0 : index
      %c0_24 = arith.constant 0 : index
      %29 = vector.load %arg6[%c0_22, %c0_23, %c0_24] : memref<1x8x128xf32, #tpu.memory_space<vmem>>, vector<1x8x128xf32>
      %30 = vector.shape_cast %29 : vector<1x8x128xf32> to vector<8x128xf32>
      %31 = arith.addf %30, %13 : vector<8x128xf32>
      %c0_25 = arith.constant 0 : index
      %c0_26 = arith.constant 0 : index
      %c0_27 = arith.constant 0 : index
      %32 = vector.load %arg6[%c0_25, %c0_26, %c0_27] : memref<1x8x128xf32, #tpu.memory_space<vmem>>, vector<1x8x128xf32>
      %33 = vector.shape_cast %32 : vector<1x8x128xf32> to vector<8x128xf32>
      %34 = vector.shape_cast %31 : vector<8x128xf32> to vector<1x8x128xf32>
      tpu.vector_store %arg6[%c0_25, %c0_26, %c0_27], %34 {strides = array<i32>} : memref<1x8x128xf32, #tpu.memory_space<vmem>>, vector<1x8x128xf32>,
      %c1_i32_28 = arith.constant 1 : i32
    } else {
    }
    return
  }
  func.func @transform_0(%arg0: i32, %arg1: i32) -> (i32, i32, i32) {
    %c1_i32 = arith.constant 1 : i32
    %0 = arith.muli %arg0, %c1_i32 : i32
    %1 = arith.addi %0, %arg1 : i32
    %c0_i32 = arith.constant 0 : i32
    %2 = arith.minsi %1, %c0_i32 : i32
    %c0_i32_0 = arith.constant 0 : i32
    %c0_i32_1 = arith.constant 0 : i32
    %c0_i32_2 = arith.constant 0 : i32
    return %c0_i32_0, %c0_i32_1, %2 : i32, i32, i32
  }
  func.func @transform_1(%arg0: i32, %arg1: i32) -> (i32, i32) {
    %c1_i32 = arith.constant 1 : i32
    %0 = arith.muli %arg0, %c1_i32 : i32
    %1 = arith.addi %0, %arg1 : i32
    %c0_i32 = arith.constant 0 : i32
    %2 = arith.minsi %1, %c0_i32 : i32
    %c0_i32_0 = arith.constant 0 : i32
    %c0_i32_1 = arith.constant 0 : i32
    return %c0_i32_0, %2 : i32, i32
  }
  func.func @transform_2(%arg0: i32, %arg1: i32) -> (i32, i32, i32, i32) {
    %c0_i32 = arith.constant 0 : i32
    %c0_i32_0 = arith.constant 0 : i32
    %c0_i32_1 = arith.constant 0 : i32
    %c0_i32_2 = arith.constant 0 : i32
    return %arg0, %c0_i32, %c0_i32_0, %c0_i32_1 : i32, i32, i32, i32
  }
  func.func @transform_3(%arg0: i32, %arg1: i32) -> (i32, i32, i32, i32) {
    %c0_i32 = arith.constant 0 : i32
    %c0_i32_0 = arith.constant 0 : i32
    %c0_i32_1 = arith.constant 0 : i32
    %c0_i32_2 = arith.constant 0 : i32
    return %arg0, %c0_i32, %c0_i32_0, %c0_i32_1 : i32, i32, i32, i32
  }
  func.func @transform_4(%arg0: i32, %arg1: i32) -> (i32, i32, i32) {
    %c0_i32 = arith.constant 0 : i32
    %c0_i32_0 = arith.constant 0 : i32
    %c0_i32_1 = arith.constant 0 : i32
    return %arg0, %c0_i32, %c0_i32_0 : i32, i32, i32
  }
}

</mosaic_0001>

<bundles_post_ra>
// kernel: tpu_custom_call.1
= control target key start
LH: loop header
LB: loop body
LE: loop exit
PB: predicated region body
PF: predicated region fallthrough
CT: control target
= control target key end

     0   :  { %s1233_s0 = inlined_call_operand.hbm [shape: f32[2,8,128], index: 0, kind: input, shape index: {}]   ;;  %s1234_s1 = inlined_call_operand.hbm [shape: f32[8,128], index: 1, kind: input, shape index: {}]   ;;  %s1235_s2 = inlined_call_operand.hbm [shape: f32[2,2,8,128], index: 2, kind: output, shape index: {0}]   ;;  %s1236_s3 = inlined_call_operand.hbm [shape: f32[2,2,8,128], index: 3, kind: output, shape index: {1}]   ;;  %s1237_s4 = inlined_call_operand.hbm [shape: f32[2,8,128], index: 4, kind: output, shape index: {2}]  }
   0x1   :  { %1242 = sst [smem:[#allocation16_spill]] %s1233_s0 }
   0x2   :  { %10 = vsyncpa [#allocation3], 0 }
   0x3   :  { %12 = vsyncpa [#allocation3 + $0x1], 0 }
   0x4   :  { %13 = vsyncpa [#allocation6], 0 }
   0x5   :  { %15 = vsyncpa [#allocation6 + $0x1], 0 }
   0x6   :  { %16 = vsyncpa [#allocation4], 0 }
   0x7   :  { %18 = vsyncpa [#allocation4 + $0x1], 0 }
   0x8   :  { %19 = vsyncpa [#allocation9], 0 }
   0x9   :  { %21 = vsyncpa [#allocation9 + $0x1], 0  ;;  %s945_s15 = smov 0   ;;  %s947_s16 = smov 0  }
   0xa   :  { %s949_s17 = smov 0   ;;  %s951_s18 = smov 0  }
   0xb   :  { %s953_s19 = smov 0   ;;  %s955_s20 = smov 0  }
   0xc   :  { %s957_s21 = smov 0   ;;  %s959_s22 = smov 0  }
   0xd LB: > { %s984_s23 = sadd.s32 4294967295, %s908_s22   ;;  %s1240_s24 = sadd.s32 4294967294, %s908_s22   ;;  %s908_s22 = sphi %s959_s22, %s27_s22   ;;  %s904_s21 = sphi %s957_s21, %s1263_s21   ;;  %s900_s20 = sphi %s955_s20, %s1262_s20   ;;  %s896_s19 = sphi %s953_s19, %s1223_s19   ;;  %s892_s18 = sphi %s951_s18, %s1261_s18   ;;  %s888_s17 = sphi %s949_s17, %s1260_s17   ;;  %s884_s16 = sphi %s947_s16, %s1259_s16   ;;  %s880_s15 = sphi %s945_s15, %s1258_s15  }
   0xe   : > { %s39_s25 = sadd.s32 1, %s904_s21  ;;  %p877_p1 = scmp.ne.s32.totalorder %s896_s19, 0 }
   0xf   : > { %p41_p0 = scmp.ge.s32.totalorder %s39_s25, 2  ;;  %p60_p2 = scmp.eq.s32.totalorder %s908_s22, 0 }
  0x10   : > { %p65_p3 = scmp.ne.s32.totalorder %s896_s19, %s892_s18  ;;  %p66_p5 = scmp.eq.s32.totalorder %s984_s23, 0 }
  0x11   : > { %s1265_s25 = smov (%p41_p0, %s39_s25), 0  ;;  %p993_p4 = por %p877_p1, %p60_p2 }
  0x12   : > { %1243 = sst [smem:[#allocation15_spill]] %s1265_s25  ;;  %p998_p6 = por %p66_p5, %p65_p3 }
  0x13   : > { %s107_s28 = ssub.s32 %s904_s21, %s1265_s25  ;;  %s110_s29 = sadd.s32 1, %s888_s17 }
  0x14   : > { %s1245_s27 = scalar_select %p998_p6, 1, 0 }
  0x15   : > { %p108_p7 = scmp.eq.s32.totalorder %s107_s28, 0  ;;  %p120_p8 = scmp.ne.s32.totalorder %s888_s17, %s884_s16 }
  0x16   : > { %p121_p9 = scmp.eq.s32.totalorder %s984_s23, 1  ;;  %p126_p10 = scmp.ne.s32.totalorder %s884_s16, %s880_s15 }
  0x17   : > { %s1006_s30 = scalar_select %p108_p7, %s888_s17, %s110_s29  }
  0x18   : > { %p127_p11 = scmp.eq.s32.totalorder %s1240_s24, 1  ;;  %p1015_p12 = por %p121_p9, %p120_p8 }
  0x19   : > { %p612_p1 = scmp.lt.s32.totalorder %s908_s22, 2  ;;  %s910_s7 = smov [#allocation2]  }
  0x1a   : > { %s1246_s5 = scalar_select %p1015_p12, 1, 0 }
  0x1b   : > { %p1020_p0 = por %p127_p11, %p126_p10  ;;  %s212_s8 = sshll.u32 %s910_s7, 4  ;;  %s213_s8 = int_to_ptr.vmem [resolvable:$true] %s212_s8 }
  0x1c   : > { %p1027_p2 = pnand %p612_p1, %p993_p4  ;;  %s1249_s0 = sld [smem:[#allocation16_spill]] }
  0x1d   : > { %s1247_s6 = scalar_select %p1020_p0, 1, 0 }
  0x1e   : > { %p693_p5 = pneg %p1027_p2 }
  0x22   : > { %s691_s12 = scalar_lea.hbm %s1249_s0, 256 }
  0x23   : > { %p692_p3 = scmp.ne.s32.totalorder %s1249_s0, %s691_s12  ;;  %p698_p8 = scmp.lt.s32.totalorder %s691_s12, %s691_s12 }
  0x25   : > { %p694_p7 = pnand %p693_p5, %p692_p3 }
  0x27   : > { %p695_p4 = pneg %p694_p7 }
  0x29   : > { %p700_p9 = pnand %p698_p8, %p695_p4 }
  0x2b   : > { %703 = shalt.err (!%p700_p9)
}
  0x2c   : > { %s704_s18 = scalar_lea.vmem %s213_s8, 256  ;;  %s711_s26 = scalar_lea.vmem %s213_s8, 512 }
  0x2d   : > { %p705_p10 = scmp.ne.s32.totalorder %s213_s8, %s704_s18  ;;  %p712_p13 = scmp.lt.s32.totalorder %s213_s8, %s213_s8 }
  0x2e   : > { %p713_p0 = scmp.lt.s32.totalorder %s711_s26, %s704_s18 }
  0x2f   : > { %p707_p11 = pnand %p705_p10, %p693_p5 }
  0x30   : > { %p714_p12 = por %p713_p0, %p712_p13 }
  0x31   : > { %p708_p1 = pneg %p707_p11 }
  0x33   : > { %p715_p6 = pnand %p714_p12, %p708_p1 }
  0x35   : > { %718 = shalt.err (!%p715_p6)
}
  0x36   : > { %s911_s28 = smov 128   ;;  %s912_s29 = smov 8  }
  0x37   : > { %598 = dma.hbm_to_vmem [thread:$0]  (!%p1027_p2), %s1249_s0, 256, %s213_s8, [#allocation3], %s911_s28, %s911_s28, %s912_s29  }
  0x38   : > { %p566_p3 = scmp.ge.s32.totalorder %s908_s22, 1  ;;  %p241_p7 = scmp.lt.s32.totalorder %s908_s22, 3 }
  0x39   : > { %s913_s12 = smov [#allocation5]   ;;  %s719_s26 = scalar_lea.hbm %s1234_s1, 128 }
  0x3a   : > { %p1052_p4 = pnand %p566_p3, %p241_p7  ;;  %s236_s13 = sshll.u32 %s913_s12, 4  ;;  %s237_s13 = int_to_ptr.vmem [resolvable:$true] %s236_s13 }
  0x3b   : > { %p720_p6 = scmp.ne.s32.totalorder %s1234_s1, %s719_s26  ;;  %p726_p0 = scmp.lt.s32.totalorder %s719_s26, %s719_s26 }
  0x3c   : > { %s1250_s11 = scalar_select %p1052_p4, 1, 0 }
  0x3d   : > { %p722_p12 = pnand %p720_p6, %p693_p5 }
  0x3f   : > { %p723_p13 = pneg %p722_p12 }
  0x41   : > { %p728_p8 = pnand %p726_p0, %p723_p13 }
  0x43   : > { %731 = shalt.err (!%p728_p8)
}
  0x44   : > { %s732_s8 = scalar_lea.vmem %s237_s13, 128  ;;  %s739_s28 = scalar_lea.vmem %s237_s13, 256 }
  0x45   : > { %p733_p9 = scmp.ne.s32.totalorder %s237_s13, %s732_s8  ;;  %p740_p1 = scmp.lt.s32.totalorder %s237_s13, %s237_s13 }
  0x46   : > { %p741_p3 = scmp.lt.s32.totalorder %s739_s28, %s732_s8 }
  0x47   : > { %p735_p10 = pnand %p733_p9, %p693_p5 }
  0x48   : > { %p742_p7 = por %p741_p3, %p740_p1 }
  0x49   : > { %p736_p11 = pneg %p735_p10 }
  0x4b   : > { %p743_p4 = pnand %p742_p7, %p736_p11 }
  0x4d   : > { %746 = shalt.err (!%p743_p4)
}
  0x4e   : > { %601 = dma.hbm_to_vmem [thread:$0]  (!%p1027_p2), %s1234_s1, 128, %s237_s13, [#allocation6]  }
  0x4f   : > { %p1251_p6 = scmp.ne.s32.totalorder %s1250_s11, 0 }
  0x50   : > { %s247_s29 = sand.u32 (!%p1251_p6), 1, %s896_s19   ;;  %p1252_p5 = scmp.ne.s32.totalorder (!%p1251_p6), %s1245_s27, 0 }
  0x51   : > { %245 = sbr.rel (%p1251_p6) target bundleno = 178 (0xb2), region = 28  ;;  %s567_s7 = sshll.u32 (!%p1251_p6), %s247_s29, 4 }
  0x52   : > { %s248_s10 = scalar_lea.sflag (!%p1251_p6), [#allocation3], %s247_s29  ;;  %s251_s12 = scalar_lea.vmem (!%p1251_p6), [#allocation2], %s567_s7 }
  0x56   : > { %862 = dma.done.wait (%p1252_p5), %s248_s10, 256  }
  0x57   : > { %864 = vsyncadd (%p1252_p5), %s248_s10, 4294967040  ;;  %s568_s9 = sshll.u32 %s247_s29, 3  ;;  %s257_s14 = scalar_lea.sflag [#allocation6], %s247_s29 }
  0x58   : > { %s260_s18 = scalar_lea.vmem [#allocation5], %s568_s9 }
  0x59   : > { %866 = dma.done.wait (%p1252_p5), %s257_s14, 128  }
  0x5a   : > { %868 = vsyncadd (%p1252_p5), %s257_s14, 4294967168  ;;  %s1085_s11 = sand.u32 1, %s884_s16   ;;  %v914_v0 = vmov 0.0   ;;  %p572_p2 = scmp.ge.s32.totalorder %s900_s20, 1 }
  0x5b   : > { %s569_s13 = sshll.u32 %s1085_s11, 4  ;;  %s571_s26 = sshll.u32 %s1085_s11, 3 }
  0x5c   : > { %s1089_s8 = scalar_lea.vmem [#allocation7], %s569_s13  ;;  %s1093_s28 = scalar_lea.vmem [#allocation8], %s569_s13 }
  0x5d   : > { %311 = vst [vmem:[%s1089_s8] sm:$0xff] %v914_v0  ;;  %312 = vst [vmem:[%s1089_s8 + $0x8] sm:$0xff] %v914_v0  ;;  %s1097_s27 = scalar_lea.vmem [#allocation10], %s571_s26  ;;  %319 = sbr.rel (%p572_p2) target bundleno = 107 (0x6b), region = 44 }
  0x5e   : > { %313 = vst [vmem:[%s1093_s28] sm:$0xff] %v914_v0  ;;  %314 = vst [vmem:[%s1093_s28 + $0x8] sm:$0xff] %v914_v0 }
  0x5f   : > { %315 = vst [vmem:[%s1097_s27] sm:$0xff] %v914_v0 }
  0x62   : > { %v320_v1 = vld [vmem:[%s251_s12] sm:$0xff]  ;;  %v321_v5 = vld [vmem:[%s251_s12 + $0x8] sm:$0xff] }
  0x63   : > { %v322_v2 = vld [vmem:[%s260_s18] sm:$0xff] }
  0x64   : > { %v323_v3 = vld [vmem:[%s1089_s8] sm:$0xff]  ;;  %v325_v4 = vmul.f32 %v322_v2, %v320_v1  ;;  %v324_v6 = vld [vmem:[%s1089_s8 + $0x8] sm:$0xff]  ;;  %v326_v8 = vmul.f32 %v322_v2, %v321_v5 }
  0x65   : > { %v331_v7 = vld [vmem:[%s1093_s28] sm:$0xff]  ;;  %v332_v10 = vld [vmem:[%s1093_s28 + $0x8] sm:$0xff] }
  0x66   : > { %v333_v9 = vadd.f32 %v331_v7, %v320_v1  ;;  %v337_v11 = vld [vmem:[%s1097_s27] sm:$0xff]  ;;  %v327_v12 = vadd.f32 %v325_v4, %v323_v3  ;;  %v334_v13 = vadd.f32 %v332_v10, %v321_v5  ;;  %v328_v15 = vadd.f32 %v326_v8, %v324_v6 }
  0x67   : > { %v338_v14 = vadd.f32 %v337_v11, %v322_v2 }
  0x68   : > { %335 = vst [vmem:[%s1093_s28] sm:$0xff] %v333_v9  ;;  %329 = vst [vmem:[%s1089_s8] sm:$0xff] %v327_v12 }
  0x69   : > { %336 = vst [vmem:[%s1093_s28 + $0x8] sm:$0xff] %v334_v13  ;;  %339 = vst [vmem:[%s1097_s27] sm:$0xff] %v338_v14 }
  0x6a   : > { %330 = vst [vmem:[%s1089_s8 + $0x8] sm:$0xff] %v328_v15 }
  0x6b PF: > { %s345_s24 = sand.u32 1, %s984_s23   ;;  %s583_s25 = sshll.u32 %s900_s20, 8 }
  0x6c   : > { %s1116_s10 = scalar_lea.hbm %s1236_s3, %s583_s25  ;;  %s380_s12 = sshll.u32 %s1093_s28, 4  ;;  %s1119_s12 = int_to_ptr.vmem [resolvable:$true] %s380_s12 }
  0x6d   : > { %s1124_s18 = scalar_lea.hbm %s1235_s2, %s583_s25  ;;  %s1126_s13 = scalar_lea.sflag [#allocation9], %s345_s24 }
  0x6e   : > { %s747_s23 = scalar_lea.vmem %s1119_s12, 256  ;;  %p1253_p12 = scmp.ne.s32.totalorder %s1246_s5, 0 }
  0x6f   : > { %p748_p4 = scmp.ne.s32.totalorder %s1119_s12, %s747_s23  ;;  %s915_s26 = smov [#allocation8]  }
  0x70   : > { %s751_s29 = sshll.u32 %s915_s26, 4  ;;  %s752_s29 = int_to_ptr.vmem [resolvable:$false] %s751_s29 }
  0x71   : > { %p749_p13 = pnand %p748_p4, %p1253_p12  ;;  %s753_s28 = scalar_lea.vmem %s752_s29, 512 }
  0x72   : > { %p754_p8 = scmp.lt.s32.totalorder %s1119_s12, %s752_s29  ;;  %p755_p9 = scmp.lt.s32.totalorder %s753_s28, %s747_s23 }
  0x73   : > { %p750_p0 = pneg %p749_p13 }
  0x74   : > { %p756_p10 = por %p755_p9, %p754_p8 }
  0x76   : > { %p757_p11 = pnand %p756_p10, %p750_p0 }
  0x78   : > { %760 = shalt.err (!%p757_p11)
}
  0x79   : > { %s761_s24 = scalar_lea.hbm %s1116_s10, 256  ;;  %s765_s9 = scalar_lea.hbm %s1236_s3, 512 }
  0x7a   : > { %p762_p1 = scmp.ne.s32.totalorder %s1116_s10, %s761_s24  ;;  %p766_p6 = scmp.lt.s32.totalorder %s1116_s10, %s1236_s3 }
  0x7b   : > { %p767_p5 = scmp.lt.s32.totalorder %s765_s9, %s761_s24 }
  0x7c   : > { %p763_p3 = pnand %p762_p1, %p1253_p12 }
  0x7d   : > { %p768_p2 = por %p767_p5, %p766_p6 }
  0x7e   : > { %p764_p7 = pneg %p763_p3 }
  0x80   : > { %p769_p4 = pnand %p768_p2, %p764_p7 }
  0x82   : > { %772 = shalt.err (!%p769_p4)
}
  0x83   : > { %s916_s23 = smov 128   ;;  %s917_s29 = smov 8  }
  0x84   : > { %590 = dma.vmem_to_hbm [thread:$0]  (%p1253_p12), %s1119_s12, 256, %s1116_s10, %s1126_s13, %s916_s23, %s916_s23, %s917_s29  }
  0x85   : > { %s364_s28 = sshll.u32 %s1089_s8, 4  ;;  %s580_s24 = sshll.u32 %s900_s20, 7  ;;  %s1154_s28 = int_to_ptr.vmem [resolvable:$true] %s364_s28 }
  0x86   : > { %s1159_s9 = scalar_lea.hbm %s1237_s4, %s580_s24  ;;  %s341_s14 = scalar_lea.sflag [#allocation4], %s1085_s11 }
  0x87   : > { %s773_s26 = scalar_lea.vmem %s1154_s28, 256  ;;  %s918_s0 = smov [#allocation7]  }
  0x88   : > { %p774_p13 = scmp.ne.s32.totalorder %s1154_s28, %s773_s26  ;;  %s777_s10 = sshll.u32 %s918_s0, 4  ;;  %s778_s10 = int_to_ptr.vmem [resolvable:$false] %s777_s10 }
  0x89   : > { %s779_s20 = scalar_lea.vmem %s778_s10, 512  ;;  %p780_p9 = scmp.lt.s32.totalorder %s1154_s28, %s778_s10 }
  0x8a   : > { %p775_p0 = pnand %p774_p13, %p1253_p12  ;;  %p781_p10 = scmp.lt.s32.totalorder %s779_s20, %s773_s26 }
  0x8c   : > { %p776_p8 = pneg %p775_p0  ;;  %p782_p11 = por %p781_p10, %p780_p9 }
  0x8e   : > { %p783_p1 = pnand %p782_p11, %p776_p8 }
  0x90   : > { %786 = shalt.err (!%p783_p1)
}
  0x91   : > { %s787_s8 = scalar_lea.hbm %s1124_s18, 256  ;;  %s791_s0 = scalar_lea.hbm %s1235_s2, 512 }
  0x92   : > { %p788_p3 = scmp.ne.s32.totalorder %s1124_s18, %s787_s8  ;;  %p792_p5 = scmp.lt.s32.totalorder %s1124_s18, %s1235_s2 }
  0x93   : > { %p793_p2 = scmp.lt.s32.totalorder %s791_s0, %s787_s8 }
  0x94   : > { %p789_p7 = pnand %p788_p3, %p1253_p12 }
  0x95   : > { %p794_p4 = por %p793_p2, %p792_p5 }
  0x96   : > { %p790_p6 = pneg %p789_p7 }
  0x98   : > { %p795_p13 = pnand %p794_p4, %p790_p6 }
  0x9a   : > { %798 = shalt.err (!%p795_p13)
}
  0x9b   : > { %589 = dma.vmem_to_hbm [thread:$0]  (%p1253_p12), %s1154_s28, 256, %s1124_s18, %s341_s14, %s916_s23, %s916_s23, %s917_s29  }
  0x9c   : > { %s396_s7 = sshll.u32 %s1097_s27, 4  ;;  %s919_s10 = smov [#allocation10]   ;;  %s397_s7 = int_to_ptr.vmem [resolvable:$true] %s396_s7 }
  0x9d   : > { %s799_s26 = scalar_lea.vmem %s397_s7, 128  ;;  %s803_s20 = sshll.u32 %s919_s10, 4  ;;  %s804_s20 = int_to_ptr.vmem [resolvable:$false] %s803_s20 }
  0x9e   : > { %p800_p0 = scmp.ne.s32.totalorder %s397_s7, %s799_s26  ;;  %s805_s8 = scalar_lea.vmem %s804_s20, 256 }
  0x9f   : > { %p806_p10 = scmp.lt.s32.totalorder %s397_s7, %s804_s20  ;;  %p807_p11 = scmp.lt.s32.totalorder %s805_s8, %s799_s26 }
  0xa0   : > { %p801_p8 = pnand %p800_p0, %p1253_p12 }
  0xa1   : > { %p808_p1 = por %p807_p11, %p806_p10 }
  0xa2   : > { %p802_p9 = pneg %p801_p8 }
  0xa4   : > { %p809_p3 = pnand %p808_p1, %p802_p9 }
  0xa6   : > { %812 = shalt.err (!%p809_p3)
}
  0xa7   : > { %s813_s27 = scalar_lea.hbm %s1159_s9, 128  ;;  %s817_s29 = scalar_lea.hbm %s1237_s4, 256 }
  0xa8   : > { %p814_p7 = scmp.ne.s32.totalorder %s1159_s9, %s813_s27  ;;  %p818_p2 = scmp.lt.s32.totalorder %s1159_s9, %s1237_s4 }
  0xa9   : > { %p819_p4 = scmp.lt.s32.totalorder %s817_s29, %s813_s27 }
  0xaa   : > { %p815_p6 = pnand %p814_p7, %p1253_p12 }
  0xab   : > { %p820_p13 = por %p819_p4, %p818_p2 }
  0xac   : > { %p816_p5 = pneg %p815_p6 }
  0xae   : > { %p821_p0 = pnand %p820_p13, %p816_p5 }
  0xb0   : > { %824 = shalt.err (!%p821_p0)
}
  0xb1   : > { %591 = dma.vmem_to_hbm [thread:$0]  (%p1253_p12), %s397_s7, 128, %s1159_s9, %s1126_s13  }
  0xb2 PF: > { %s408_s11 = sand.u32 1, %s880_s15   ;;  %p1254_p8 = scmp.ne.s32.totalorder %s1247_s6, 0 }
  0xb3   : > { %p1255_p9 = scmp.ge.s32.totalorder %s908_s22, 2  ;;  %s409_s12 = scalar_lea.sflag [#allocation4], %s408_s11 }
  0xb5   : > { %p603_p10 = pnand %p1255_p9, %p1254_p8 }
  0xb7   : > { %p604_p11 = pneg %p603_p10 }
  0xb9   : > { %870 = dma.done.wait (%p604_p11), %s409_s12, 256  }
  0xba   : > { %872 = vsyncadd (%p604_p11), %s409_s12, 4294967040  ;;  %s1256_s0 = sadd.s32 4294967294, %s908_s22  }
  0xbb   : > { %s417_s24 = sand.u32 1, %s1256_s0  }
  0xbc   : > { %s418_s25 = scalar_lea.sflag [#allocation9], %s417_s24 }
  0xbd   : > { %874 = dma.done.wait (%p604_p11), %s418_s25, 384  }
  0xbe   : > { %876 = vsyncadd (%p604_p11), %s418_s25, 4294966912  ;;  %s27_s22 = sadd.s32 1, %s908_s22   ;;  %s1257_s5 = sld [smem:[#allocation15_spill]] }
  0xbf   : > { %p24_p12 = scmp.ge.s32.totalorder %s27_s22, 4   ;;  %s1258_s15 = smov %s884_s16 }
  0xc0   : > { %s1259_s16 = smov %s888_s17  ;;  %s1260_s17 = smov %s1006_s30 }
  0xc1   : > { %s1261_s18 = smov %s896_s19  ;;  %s1223_s19 = smov 0  }
  0xc2   : > { %s1262_s20 = smov %s904_s21  ;;  %26 = sbr.rel (!%p24_p12) target bundleno = 13 (0xd), region = 126 }
  0xc4   : > { %s1263_s21 = smov %s1257_s5 }
  0xc7   :  { %432 = vsyncpa [#allocation3], 1 }
  0xc8   :  { %434 = vsyncpa [#allocation3 + $0x1], 1 }
  0xc9   :  { %435 = vsyncpa [#allocation6], 1 }
  0xca   :  { %437 = vsyncpa [#allocation6 + $0x1], 1 }
  0xcb   :  { %438 = vsyncpa [#allocation4], 1 }
  0xcc   :  { %440 = vsyncpa [#allocation4 + $0x1], 1 }
  0xcd   :  { %441 = vsyncpa [#allocation9], 1 }
  0xce   :  { %443 = vsyncpa [#allocation9 + $0x1], 1 }

</bundles_post_ra>
